<compile_context>
chip_gen: v7x
topology: tpu7x:2x2x1
jax: 0.10.0
libtpu: 0.0.40
codegen_flags: <defaults>
</compile_context>

<pallas_src>
import numpy as np
import jax
import jax.numpy as jnp
from jax.experimental import pallas as pl
from jax.experimental.pallas import tpu as pltpu

_LANE = 128
_TARGET_BLOCK_BYTES = 4 * 1024 * 1024   # input bytes per grid step
_MIN_GRID_BLOCKS = 8                    # keep >=8 vertex blocks for v7x megacore

_VMEM_BUDGET_CACHE = None


def _vmem_budget_bytes():
    """Generation-aware VMEM budget for the pipelined buffers (trace-time)."""
    global _VMEM_BUDGET_CACHE
    if _VMEM_BUDGET_CACHE is None:
        cap = 128 * 1024 * 1024
        try:
            cap = int(getattr(pltpu.get_tpu_info(), "vmem_capacity_bytes", cap))
        except Exception:
            pass
        # 64-MiB-VMEM chips (v7x, 2 TCs sharing pressure) -> 16 MiB budget;
        # 128-MiB chips (v5e/v6e) -> 32 MiB.
        _VMEM_BUDGET_CACHE = (16 if cap <= 64 * 1024 * 1024 else 32) * 1024 * 1024
    return _VMEM_BUDGET_CACHE


def _round_down_lane(x):
    return max(_LANE, (x // _LANE) * _LANE)


def _choose_tile_v(B, M, V, itemsize, vmem_budget):
    """Pick the vertex tile (multiple of 128, or the full extent V)."""
    v_ceil = pl.cdiv(V, _LANE) * _LANE
    # 1) Byte-budget target per grid step (amortize per-step pipeline overhead).
    tv = _round_down_lane(_TARGET_BLOCK_BYTES // max(1, B * M * itemsize))
    # 2) VMEM cap: double-buffered input (B*M rows) + output (B rows).
    per_lane_bytes = 2 * (B * M + B) * itemsize
    tv = min(tv, _round_down_lane(max(1, vmem_budget // per_lane_bytes)))
    # 3) Keep >= _MIN_GRID_BLOCKS blocks along V so the "parallel" axis can be
    #    sharded across v7x's two TensorCores (irrelevant but harmless on
    #    single-TC v5e/v6e).
    if v_ceil >= _MIN_GRID_BLOCKS * _LANE:
        tv = min(tv, _round_down_lane(v_ceil // _MIN_GRID_BLOCKS))
    tv = min(tv, v_ceil)
    # If a single block covers everything, use the exact extent (block ==
    # full dim is always legal, no masking needed at all).
    if tv >= V:
        tv = V
    return tv


# ----------------------------------------------------------------------------
# Pallas kernel: out[b, v] = sum_m x[b*M + m, v] * w_norm[m]   (w_norm sums to 1)
# ----------------------------------------------------------------------------
def _weighted_avg_kernel(w_ref, x_ref, o_ref):
    # w_ref : SMEM (M,)        pre-normalized scalar weights
    # x_ref : VMEM (B*M, TV)   rows are b-major: (b0m0, b0m1, ..., b1m0, ...)
    # o_ref : VMEM (B, TV)     weighted-average output tile
    B = o_ref.shape[0]
    M = w_ref.shape[0]
    # Model m across the batch = sublane-strided slice (start=m, size=B, stride=M).
    acc = x_ref[pl.ds(0, B, stride=M), :] * w_ref[0]
    for m in range(1, M):            # M is small & static -> unrolled VPU loop
        acc = acc + x_ref[pl.ds(m, B, stride=M), :] * w_ref[m]
    o_ref[...] = acc.astype(o_ref.dtype)


def weighted_model_average(data, weight_norm):
    """data: (B, M, V); weight_norm: (M,), sums to 1.  Returns (B, V)."""
    B, M, V = data.shape
    x2d = data.reshape(B * M, V)     # free contiguous view (b-major, then m, v)
    itemsize = jnp.dtype(data.dtype).itemsize
    budget = _vmem_budget_bytes()
    tv = _choose_tile_v(B, M, V, itemsize, budget)
    grid = (pl.cdiv(V, tv),)

    return pl.pallas_call(
        _weighted_avg_kernel,
        out_shape=jax.ShapeDtypeStruct((B, V), data.dtype),
        grid=grid,
        in_specs=[
            pl.BlockSpec(memory_space=pltpu.MemorySpace.SMEM),    # weights
            pl.BlockSpec((B * M, tv), lambda j: (0, j)),          # signal tile
        ],
        out_specs=pl.BlockSpec((B, tv), lambda j: (0, j)),
        compiler_params=pltpu.CompilerParams(
            dimension_semantics=("parallel",),
            vmem_limit_bytes=budget,
        ),
    )(weight_norm, x2d)


# ----------------------------------------------------------------------------
# Model wrapper mirroring PostProcessModel
# ----------------------------------------------------------------------------
class PostProcessModelPallas:
    def __init__(self, subject_metadata, model_names, key):
        self.subject_metadata = subject_metadata
        self.num_models = len(model_names)
        self.side = ['l', 'r']
        # torch.rand(num_models) equivalent: uniform [0, 1).  The SAME array is
        # registered for every ROI, exactly like the PyTorch module.
        weight = jax.random.uniform(key, (self.num_models,), dtype=jnp.float32)
        self.weight = weight
        self._params = {}
        self._roi_indices = {s: {} for s in self.side}
        for side in self.side:
            for roi_name, roi_index in subject_metadata[side].items():
                roi_index = np.asarray(roi_index)
                if int(np.sum(roi_index)) > 0:
                    self._params[f'{side}_{roi_name}'] = weight
                    self._roi_indices[side][roi_name] = np.where(roi_index)[0]

        # One jitted forward per hemisphere: weight normalization, the pallas
        # kernel and ALL per-ROI gathers (a single concatenated jnp.take) are
        # fused into one dispatch.
        self._side_fns = {}
        for side in self.side:
            rois = self._roi_indices[side]
            if not rois:
                continue
            names = tuple(rois.keys())
            sizes = [int(rois[n].size) for n in names]
            offsets = tuple(int(o) for o in np.concatenate([[0], np.cumsum(sizes)]))
            all_idx = jnp.asarray(
                np.concatenate([rois[n] for n in names]), dtype=jnp.int32)

            def make_fn(names=names, offsets=offsets, all_idx=all_idx):
                @jax.jit
                def fn(data, weight):
                    # Host-of-kernel weight normalization (inside the jit), so
                    # the kernel has no wsum accumulation / full-tile divide.
                    w_norm = weight / jnp.sum(weight)
                    avg = weighted_model_average(data, w_norm)        # (B, V)
                    gathered = jnp.take(avg, all_idx, axis=1)         # one gather
                    return {n: gathered[:, offsets[i]:offsets[i + 1]]
                            for i, n in enumerate(names)}
                return fn

            self._side_fns[side] = make_fn()

    def __call__(self, batch):
        output_dict = {}
        for side in self.side:
            data = batch['data_r'] if side == 'r' else batch['data_l']
            output_dict[side] = {}
            if side in self._side_fns:
                # Gather-after-reduce is identical to the per-ROI weighted sum
                # because every ROI shares the same weight parameter.
                output_dict[side] = self._side_fns[side](data, self.weight)
        return output_dict


# ----------------------------------------------------------------------------
# Pure-JAX reference (direct transcription of the PyTorch forward)
# ----------------------------------------------------------------------------
def reference_forward(model, batch):
    out = {}
    for side in model.side:
        data = batch['data_r'] if side == 'r' else batch['data_l']
        out[side] = {}
        for roi_name, roi_index in model.subject_metadata[side].items():
            roi_index = np.asarray(roi_index)
            if int(np.sum(roi_index)) > 0:
                roi_signal = data[:, :, np.where(roi_index)[0]]
                weight = model._params[f'{side}_{roi_name}']
                total = 0
                weight_sum = 0
                for i in range(model.num_models):
                    total = total + roi_signal[:, i] * weight[i]
                    weight_sum = weight_sum + weight[i]
                out[side][roi_name] = total / weight_sum
    return out


if __name__ == "__main__":
    key = jax.random.PRNGKey(0)
    k_w, k_l, k_r, k_big = jax.random.split(key, 4)

    num_models = 4
    num_vertices = 16
    batch_size = 2
    model_names = [f"model_{i}" for i in range(num_models)]

    def mask(on_idx):
        m = np.zeros(num_vertices, dtype=np.int32)
        m[list(on_idx)] = 1
        return m

    subject_metadata = {
        'l': {
            'V1': mask([0, 1, 2, 3, 4]),
            'V2': mask([5, 6, 7]),
            'empty_roi': np.zeros(num_vertices, dtype=np.int32),  # skipped
        },
        'r': {
            'V1': mask([8, 9, 10, 11]),
            'V2': mask([0, 2, 4, 6, 8, 10]),
        },
    }

    batch = {
        'data_l': jax.random.normal(k_l, (batch_size, num_models, num_vertices),
                                    dtype=jnp.float32),
        'data_r': jax.random.normal(k_r, (batch_size, num_models, num_vertices),
                                    dtype=jnp.float32),
    }

    model = PostProcessModelPallas(subject_metadata, model_names, k_w)

    out = model(batch)
    out = jax.tree_util.tree_map(jax.block_until_ready, out)

    ref = reference_forward(model, batch)

    ok = True
    for side in ref:
        for roi_name in ref[side]:
            got = np.asarray(out[side][roi_name])
            exp = np.asarray(ref[side][roi_name])
            if got.shape != exp.shape or not np.allclose(got, exp, atol=1e-5,
                                                         rtol=1e-5):
                ok = False
                print(f"MISMATCH {side}/{roi_name}: "
                      f"max abs err {np.max(np.abs(got - exp))}")

    # Extra check: multi-block vertex grid with a ragged tail (V % 128 != 0,
    # no host-side padding pass anymore).
    V_big = 4000
    x_big = jax.random.normal(k_big, (batch_size, num_models, V_big),
                              dtype=jnp.float32)
    w_norm = model.weight / jnp.sum(model.weight)
    got_big = jax.block_until_ready(weighted_model_average(x_big, w_norm))
    exp_big = jnp.einsum('bmv,m->bv', x_big, w_norm)
    if not np.allclose(np.asarray(got_big), np.asarray(exp_big),
                       atol=1e-5, rtol=1e-5):
        ok = False
        print("MISMATCH ragged-tail check: max abs err "
              f"{np.max(np.abs(np.asarray(got_big) - np.asarray(exp_big)))}")

    # TODO(synk): nn.Parameter registration via setattr (requires_grad
    # bookkeeping) has no kernel-level equivalent; it stays as plain Python
    # dict bookkeeping of the shared weight array.
    if ok:
        print("KERNEL_OK")
</pallas_src>

<mosaic_0001>
module attributes {stable_mosaic.version = 11 : i64} {
  func.func @_weighted_avg_kernel(%arg0: i32, %arg1: memref<4xf32, #tpu.memory_space<smem>>, %arg2: memref<8x16xf32, #tpu.memory_space<vmem>>, %arg3: memref<2x16xf32, #tpu.memory_space<vmem>>) attributes {dimension_semantics = [#tpu.dimension_semantics<parallel>], iteration_bounds = array<i64: 1>, scalar_prefetch = 0 : i64, scratch_operands = 0 : i64, tpu.core_type = #tpu.core_type<tc>, window_params = [{transform_indices = @transform_0, window_bounds = array<i64: 4>}, {transform_indices = @transform_1, window_bounds = array<i64: 8, 16>}, {transform_indices = @transform_2, window_bounds = array<i64: 2, 16>}]} {
    %c0 = arith.constant 0 : index
    %c0_0 = arith.constant 0 : index
    %0 = tpu.strided_load %arg2[%c0, %c0_0] {strides = array<i32: 4, 1>} : memref<8x16xf32, #tpu.memory_space<vmem>>, vector<2x16xf32>
    %c0_1 = arith.constant 0 : index
    %1 = memref.load %arg1[%c0_1] : memref<4xf32, #tpu.memory_space<smem>>
    %2 = vector.broadcast %1 : f32 to vector<2x16xf32>
    %3 = arith.mulf %0, %2 : vector<2x16xf32>
    %c1 = arith.constant 1 : index
    %c0_2 = arith.constant 0 : index
    %4 = tpu.strided_load %arg2[%c1, %c0_2] {strides = array<i32: 4, 1>} : memref<8x16xf32, #tpu.memory_space<vmem>>, vector<2x16xf32>
    %c1_3 = arith.constant 1 : index
    %5 = memref.load %arg1[%c1_3] : memref<4xf32, #tpu.memory_space<smem>>
    %6 = vector.broadcast %5 : f32 to vector<2x16xf32>
    %7 = arith.mulf %4, %6 : vector<2x16xf32>
    %8 = arith.addf %3, %7 : vector<2x16xf32>
    %c2 = arith.constant 2 : index
    %c0_4 = arith.constant 0 : index
    %9 = tpu.strided_load %arg2[%c2, %c0_4] {strides = array<i32: 4, 1>} : memref<8x16xf32, #tpu.memory_space<vmem>>, vector<2x16xf32>
    %c2_5 = arith.constant 2 : index
    %10 = memref.load %arg1[%c2_5] : memref<4xf32, #tpu.memory_space<smem>>
    %11 = vector.broadcast %10 : f32 to vector<2x16xf32>
    %12 = arith.mulf %9, %11 : vector<2x16xf32>
    %13 = arith.addf %8, %12 : vector<2x16xf32>
    %c3 = arith.constant 3 : index
    %c0_6 = arith.constant 0 : index
    %14 = tpu.strided_load %arg2[%c3, %c0_6] {strides = array<i32: 4, 1>} : memref<8x16xf32, #tpu.memory_space<vmem>>, vector<2x16xf32>
    %c3_7 = arith.constant 3 : index
    %15 = memref.load %arg1[%c3_7] : memref<4xf32, #tpu.memory_space<smem>>
    %16 = vector.broadcast %15 : f32 to vector<2x16xf32>
    %17 = arith.mulf %14, %16 : vector<2x16xf32>
    %18 = arith.addf %13, %17 : vector<2x16xf32>
    %c0_8 = arith.constant 0 : index
    %c0_9 = arith.constant 0 : index
    %19 = vector.load %arg3[%c0_8, %c0_9] : memref<2x16xf32, #tpu.memory_space<vmem>>, vector<2x16xf32>
    tpu.vector_store %arg3[%c0_8, %c0_9], %18 {strides = array<i32>} : memref<2x16xf32, #tpu.memory_space<vmem>>, vector<2x16xf32>,
    return
  }
  func.func @transform_0(%arg0: i32) -> i32 {
    %c0_i32 = arith.constant 0 : i32
    %c0_i32_0 = arith.constant 0 : i32
    return %c0_i32 : i32
  }
  func.func @transform_1(%arg0: i32) -> (i32, i32) {
    %c0_i32 = arith.constant 0 : i32
    %c0_i32_0 = arith.constant 0 : i32
    return %c0_i32, %arg0 : i32, i32
  }
  func.func @transform_2(%arg0: i32) -> (i32, i32) {
    %c0_i32 = arith.constant 0 : i32
    %c0_i32_0 = arith.constant 0 : i32
    return %c0_i32, %arg0 : i32, i32
  }
}

</mosaic_0001>

<bundles_post_ra>
// kernel: fn.1
= control target key start
LH: loop header
LB: loop body
LE: loop exit
PB: predicated region body
PF: predicated region fallthrough
CT: control target
= control target key end

     0   :  { %7 = vsyncpa [#allocation3], 0  ;;  %s108_s0 = inlined_call_operand.vmem [shape: f32[4], index: 0, kind: input, shape index: {}]   ;;  %s109_s1 = inlined_call_operand.vmem [shape: f32[8,16], index: 1, kind: input, shape index: {}]   ;;  %s110_s2 = inlined_call_operand.vmem [shape: f32[2,16], index: 2, kind: output, shape index: {}]  }
   0x1   :  { %s14_s11 = sshll.u32 %s108_s0, 4  ;;  %s15_s11 = int_to_ptr.vmem [resolvable:$true] %s14_s11 }
   0x2   :  { %s60_s12 = scalar_lea.vmem %s15_s11, 16  ;;  %p65_p1 = scmp.lt.s32.totalorder %s15_s11, %s15_s11 }
   0x3   :  { %p61_p0 = scmp.ne.s32.totalorder %s15_s11, %s60_s12  ;;  %p66_p2 = scmp.lt.s32.totalorder %s60_s12, %s60_s12 }
   0x5   :  { %p67_p3 = por %p66_p2, %p65_p1 }
   0x7   :  { %p68_p4 = pnand %p67_p3, %p61_p0 }
   0x9   :  { %71 = shalt.err (!%p68_p4)
}
   0xa   :  { %s74_s13 = smov [#allocation2]  }
   0xb   :  { %17 = dma.vmem_to_smem %s15_s11, 16, %s74_s13, [#allocation3]  }
   0xc   :  { %72 = dma.done.wait [#allocation3], 16  }
   0xd   :  { %73 = vsyncadd [#allocation3], 4294967280 }
   0xe   :  { %23 = sfence }
   0xf   :  { %s25_s14 = sld [smem:[#allocation2]]  ;;  %s54_s15 = sld [smem:[#allocation2 + $0x1]]  ;;  %v24_v0 = vld [vmem:[%s109_s1] ss:$4 sm:$0x3]  ;;  %vm46_vm0 = vcmask 123904  }
  0x10   :  { %s56_s16 = sld [smem:[#allocation2 + $0x2]]  ;;  %s58_s17 = sld [smem:[#allocation2 + $0x3]]  ;;  %v53_v1 = vld [vmem:[%s109_s1 + $0x1] ss:$4 sm:$0x3] }
  0x11   :  { %v55_v3 = vld [vmem:[%s109_s1 + $0x2] ss:$4 sm:$0x3]  ;;  %v57_v6 = vld [vmem:[%s109_s1 + $0x3] ss:$4 sm:$0x3] }
  0x15   :  { %v26_v2 = vstv %s25_s14  ;;  %v31_v5 = vstv %s54_s15 }
  0x16   :  { %v27_v4 = vmul.f32 %v26_v2, %v24_v0  ;;  %v32_v7 = vmul.f32 %v53_v1, %v31_v5  ;;  %v37_v8 = vstv %s56_s16  ;;  %v43_v10 = vstv %s58_s17 }
  0x17   :  { %v38_v9 = vmul.f32 %v55_v3, %v37_v8  ;;  %v44_v12 = vmul.f32 %v57_v6, %v43_v10 }
  0x18   :  { %v33_v11 = vadd.f32 %v32_v7, %v27_v4 }
  0x1a   :  { %v39_v13 = vadd.f32 %v38_v9, %v33_v11 }
  0x1c   :  { %v45_v14 = vadd.f32 %v44_v12, %v39_v13 }
  0x1e   :  { %47 = vst.msk [vmem:[%s110_s2] sm:$0x3] %vm46_vm0, %v45_v14 }
  0x1f   :  { %52 = vsyncpa [#allocation3], 1 }

</bundles_post_ra>
